<compile_context>
chip_gen: v7x
topology: tpu7x:2x2x1
jax: 0.10.0
libtpu: 0.0.40
codegen_flags: <defaults>
</compile_context>

<pallas_src>
import functools

import numpy as np
import jax
import jax.numpy as jnp
from jax.experimental import pallas as pl
from jax.experimental.pallas import tpu as pltpu


def _round_up(x, m):
    return (x + m - 1) // m * m


# --------------------------------------------------------------------------- #
# Kernel: one tile of (b, d)-flattened series through STFT -> TFB -> iSTFT
# --------------------------------------------------------------------------- #
def _seasonal_kernel(x_ref, cf_ref, sfn_ref, wr_ref, wi_ref, icf_ref, isf_ref,
                     o_ref):
    x = x_ref[...]                                                    # (TB, L) bf16
    # STFT: reflect pad + framing + rDFT folded into the cos / -sin matrices.
    sr = jnp.dot(x, cf_ref[...], preferred_element_type=jnp.float32)   # (TB, FKp)
    si = jnp.dot(x, sfn_ref[...], preferred_element_type=jnp.float32)  # (TB, FKp)

    # comp_mul with diagonal(TFB): q_r = r, q_i = -r; z = q + spec.
    r = sr * wr_ref[...] - si * wi_ref[...]
    zr = (sr + r).astype(icf_ref.dtype)
    zi = (si - r).astype(isf_ref.dtype)

    # iSTFT: irDFT + overlap-add + 1/window-envelope + center trim, as two
    # accumulating dots into the same f32 result.
    out = jnp.dot(zr, icf_ref[...], preferred_element_type=jnp.float32)
    out = out + jnp.dot(zi, isf_ref[...], preferred_element_type=jnp.float32)
    o_ref[...] = out.astype(o_ref.dtype)                             # (TB, Lout_pad)


# --------------------------------------------------------------------------- #
# Shape-static constants (built once per seq_len, in numpy)
# --------------------------------------------------------------------------- #
@functools.lru_cache(maxsize=8)
def _build_constants(L):
    N = L // 8                      # n_fft
    hop = N // 4                    # torch.stft default hop = n_fft // 4
    F = L // hop + 1                # n_frame
    K = N // 2 + 1                  # d_spec
    FK = F * K
    FKp = _round_up(FK, 128)        # lane-padded frequency axis
    p = N // 2                      # center padding on each side
    Lp = L + 2 * p
    Lout = N + hop * (F - 1)        # istft length before center trim
    Lout_pad = _round_up(L, 128)    # lane-padded output time axis

    kk = np.arange(K, dtype=np.float64)
    ff = np.arange(F, dtype=np.float64)

    # ---- forward: framing + rDFT over the reflect-padded time axis
    # TODO(synk): at production seq_len exploit the band/block sparsity of the
    # framing matrices (framed (rows,N)x(N,2K) matmuls) once the kernel is
    # actually MXU-bound; the dense form does ~Lp/N extra FLOPs.
    # TODO(synk): on v7x, fp8(e4m3)+post-accumulation scale for these MXU
    # operands roughly doubles matmul throughput and halves resident VMEM.
    tt = np.arange(Lp, dtype=np.float64)
    m = tt[:, None] - ff[None, :] * hop                          # (Lp, F)
    valid = (m >= 0) & (m < N)
    ang = 2.0 * np.pi * m[:, :, None] * kk[None, None, :] / N
    CF_pad = np.where(valid[:, :, None], np.cos(ang), 0.0).reshape(Lp, FK)
    SFn_pad = np.where(valid[:, :, None], -np.sin(ang), 0.0).reshape(Lp, FK)

    # ---- fold the reflect padding (torch.stft center=True) into the matrices
    src = np.empty(Lp, dtype=np.int64)
    src[:p] = p - np.arange(p)                   # left reflection
    src[p:p + L] = np.arange(L)                  # original samples
    src[p + L:] = L - 2 - np.arange(p)           # right reflection
    CF = np.zeros((L, FK), np.float64)
    SFn = np.zeros((L, FK), np.float64)
    np.add.at(CF, src, CF_pad)
    np.add.at(SFn, src, SFn_pad)
    CFp = np.zeros((L, FKp), np.float32);  CFp[:, :FK] = CF
    SFnp = np.zeros((L, FKp), np.float32); SFnp[:, :FK] = SFn

    # ---- inverse: irDFT + overlap-add + envelope norm + center trim
    to = np.arange(Lout, dtype=np.float64)
    mo = to[None, :] - ff[:, None] * hop                         # (F, Lout)
    cover = ((mo >= 0) & (mo < N)).astype(np.float64)
    wsum = cover.sum(axis=0)                                     # rect-window envelope
    keep = slice(p, p + L)
    m2 = mo[:, keep]                                             # (F, L)
    mask = ((m2 >= 0) & (m2 < N)).astype(np.float64)[:, None, :]
    wk = np.where((np.arange(K) == 0) | (np.arange(K) == N // 2), 1.0, 2.0)
    ang2 = 2.0 * np.pi * kk[None, :, None] * m2[:, None, :] / N  # (F, K, L)
    norm = (1.0 / (N * wsum[keep]))[None, None, :]
    ICF = (wk[None, :, None] * np.cos(ang2) * mask * norm).reshape(FK, L)
    ISF = (-wk[None, :, None] * np.sin(ang2) * mask * norm).reshape(FK, L)
    ICFp = np.zeros((FKp, Lout_pad), np.float32); ICFp[:FK, :L] = ICF
    ISFp = np.zeros((FKp, Lout_pad), np.float32); ISFp[:FK, :L] = ISF

    meta = dict(N=N, hop=hop, F=F, K=K, FK=FK, FKp=FKp, Lout_pad=Lout_pad)
    return (jnp.asarray(CFp).astype(jnp.bfloat16),
            jnp.asarray(SFnp).astype(jnp.bfloat16),
            jnp.asarray(ICFp).astype(jnp.bfloat16),
            jnp.asarray(ISFp).astype(jnp.bfloat16),
            meta)


def _default_vmem_limit_bytes():
    # Half of physical VMEM: 64 MiB on v5e/v6e (128 MiB phys), 32 MiB on v7x.
    try:
        cap = pltpu.get_tpu_info().vmem_capacity_bytes
    except Exception:
        cap = 64 * 1024 * 1024
    return int(min(cap // 2, 96 * 1024 * 1024))


# --------------------------------------------------------------------------- #
# Wrapper
# --------------------------------------------------------------------------- #
def seasonal_encoder_pallas(x, TFB_r, TFB_i, *, row_tile=512):
    """TFDNet SeasonalEncoder forward. x: (B, L, enc_in) -> (B, enc_in, L)."""
    B, L, D = x.shape
    CF, SFn, ICF, ISF, c = _build_constants(L)
    FK, FKp, Lout_pad = c["FK"], c["FKp"], c["Lout_pad"]

    # Fold enc_in into the matmul row axis, (b, d)-ordered so the kernel's
    # output lands directly in (B, D, L) layout (no trailing transpose).
    rows = B * D
    xr = jnp.transpose(x, (0, 2, 1)).reshape(rows, L).astype(jnp.bfloat16)

    # Per-row TFB diagonals (row b*D + d carries variable d's diagonal).
    # Kept f32 to match parameter precision; store bf16 to halve slab DMA if
    # the accuracy budget allows.
    wr = jnp.diagonal(TFB_r, axis1=-2, axis2=-1).reshape(D, FK).astype(jnp.float32)
    wi = jnp.diagonal(TFB_i, axis1=-2, axis2=-1).reshape(D, FK).astype(jnp.float32)
    wr = jnp.pad(wr, ((0, 0), (0, FKp - FK)))
    wi = jnp.pad(wi, ((0, 0), (0, FKp - FK)))
    wr = jnp.broadcast_to(wr[None], (B, D, FKp)).reshape(rows, FKp)
    wi = jnp.broadcast_to(wi[None], (B, D, FKp)).reshape(rows, FKp)

    if rows > row_tile:
        TB = row_tile                       # multiple of 8
        Rp = _round_up(rows, TB)
        if Rp != rows:
            xr = jnp.pad(xr, ((0, Rp - rows), (0, 0)))
            wr = jnp.pad(wr, ((0, Rp - rows), (0, 0)))
            wi = jnp.pad(wi, ((0, Rp - rows), (0, 0)))
    else:
        TB, Rp = rows, rows                 # full-extent block is always legal

    grid = (Rp // TB,)

    def run(single_buffer_constants):
        const_kw = (dict(pipeline_mode=pl.Buffered(buffer_count=1))
                    if single_buffer_constants else {})
        return pl.pallas_call(
            _seasonal_kernel,
            out_shape=jax.ShapeDtypeStruct((Rp, Lout_pad), jnp.float32),
            grid=grid,
            in_specs=[
                pl.BlockSpec((TB, L), lambda i: (i, 0)),                       # x rows
                pl.BlockSpec((L, FKp), lambda i: (0, 0), **const_kw),          # cos  (resident)
                pl.BlockSpec((L, FKp), lambda i: (0, 0), **const_kw),          # -sin (resident)
                pl.BlockSpec((TB, FKp), lambda i: (i, 0)),                     # TFB_r diag rows
                pl.BlockSpec((TB, FKp), lambda i: (i, 0)),                     # TFB_i diag rows
                pl.BlockSpec((FKp, Lout_pad), lambda i: (0, 0), **const_kw),   # inv cos (resident)
                pl.BlockSpec((FKp, Lout_pad), lambda i: (0, 0), **const_kw),   # inv sin (resident)
            ],
            out_specs=pl.BlockSpec((TB, Lout_pad), lambda i: (i, 0)),
            compiler_params=pltpu.CompilerParams(
                dimension_semantics=("parallel",),
                vmem_limit_bytes=_default_vmem_limit_bytes(),
            ),
        )(xr, CF, SFn, wr, wi, ICF, ISF)

    try:
        out = run(True)         # single-buffered resident DFT constants
    except Exception:
        out = run(False)        # jax build without pl.Buffered(1) support

    out = out[:rows].reshape(B, D, Lout_pad)
    return out[..., :L]


# --------------------------------------------------------------------------- #
# Pure-JAX reference (matches torch.stft/istft defaults, rect window)
# --------------------------------------------------------------------------- #
def _reference(x, TFB_r, TFB_i):
    B, L, D = x.shape
    N = L // 8
    hop = N // 4
    F = L // hop + 1
    xr = jnp.transpose(x, (0, 2, 1)).reshape(B * D, L)
    xp = jnp.pad(xr, ((0, 0), (N // 2, N // 2)), mode="reflect")
    frames = jnp.stack([xp[:, f * hop: f * hop + N] for f in range(F)], axis=1)
    spec = jnp.fft.rfft(frames, axis=-1)                         # (BD, F, K)
    K = spec.shape[-1]
    sr = spec.real.astype(jnp.float32).reshape(B, D, F, K)
    si = spec.imag.astype(jnp.float32).reshape(B, D, F, K)
    wr = jnp.diagonal(TFB_r, axis1=-2, axis2=-1)
    wi = jnp.diagonal(TFB_i, axis1=-2, axis2=-1)
    r = sr * wr[None] - si * wi[None]
    z = (sr + r) + 1j * (si - r)
    tf = jnp.fft.irfft(z.reshape(B * D, F, K), n=N, axis=-1)
    Lout = N + hop * (F - 1)
    y = jnp.zeros((B * D, Lout), jnp.float32)
    env = jnp.zeros((Lout,), jnp.float32)
    for f in range(F):
        y = y.at[:, f * hop: f * hop + N].add(tf[:, f])
        env = env.at[f * hop: f * hop + N].add(1.0)
    y = y / env[None, :]
    return y[:, N // 2: N // 2 + L].reshape(B, D, L)


if __name__ == "__main__":
    # configs.seq_len = 64, configs.enc_in = 4, batch = 2
    B, L, D = 2, 64, 4
    N = L // 8
    F = L // (N // 4) + 1
    K = N // 2 + 1

    key = jax.random.PRNGKey(0)
    k1, k2, k3 = jax.random.split(key, 3)
    TFB_r = jax.random.normal(k1, (D, F, K, K), dtype=jnp.float32)
    TFB_i = jax.random.normal(k2, (D, F, K, K), dtype=jnp.float32)
    x = jax.random.normal(k3, (B, L, D), dtype=jnp.float32)

    out = seasonal_encoder_pallas(x, TFB_r, TFB_i)
    out = jax.block_until_ready(out)
    assert out.shape == (B, D, L)

    ref = jax.block_until_ready(_reference(x, TFB_r, TFB_i))
    # tolerance sized for single-pass bf16 MXU with f32 accumulation
    np.testing.assert_allclose(np.asarray(out), np.asarray(ref), rtol=2e-2, atol=2e-2)

    print("KERNEL_OK")
</pallas_src>

<mosaic_0001>
module attributes {stable_mosaic.version = 11 : i64} {
  func.func @_seasonal_kernel(%arg0: i32, %arg1: memref<8x64xbf16, #tpu.memory_space<vmem>>, %arg2: memref<64x256xbf16, #tpu.memory_space<vmem>>, %arg3: memref<64x256xbf16, #tpu.memory_space<vmem>>, %arg4: memref<8x256xf32, #tpu.memory_space<vmem>>, %arg5: memref<8x256xf32, #tpu.memory_space<vmem>>, %arg6: memref<256x128xbf16, #tpu.memory_space<vmem>>, %arg7: memref<256x128xbf16, #tpu.memory_space<vmem>>, %arg8: memref<8x128xf32, #tpu.memory_space<vmem>>) attributes {dimension_semantics = [#tpu.dimension_semantics<parallel>], iteration_bounds = array<i64: 1>, scalar_prefetch = 0 : i64, scratch_operands = 0 : i64, tpu.core_type = #tpu.core_type<tc>, window_params = [{transform_indices = @transform_0, window_bounds = array<i64: 8, 64>}, {pipeline_mode = #tpu.pipeline_mode<synchronous>, transform_indices = @transform_1, window_bounds = array<i64: 64, 256>}, {pipeline_mode = #tpu.pipeline_mode<synchronous>, transform_indices = @transform_2, window_bounds = array<i64: 64, 256>}, {transform_indices = @transform_3, window_bounds = array<i64: 8, 256>}, {transform_indices = @transform_4, window_bounds = array<i64: 8, 256>}, {pipeline_mode = #tpu.pipeline_mode<synchronous>, transform_indices = @transform_5, window_bounds = array<i64: 256, 128>}, {pipeline_mode = #tpu.pipeline_mode<synchronous>, transform_indices = @transform_6, window_bounds = array<i64: 256, 128>}, {transform_indices = @transform_7, window_bounds = array<i64: 8, 128>}]} {
    %c0 = arith.constant 0 : index
    %c0_0 = arith.constant 0 : index
    %0 = vector.load %arg1[%c0, %c0_0] : memref<8x64xbf16, #tpu.memory_space<vmem>>, vector<8x64xbf16>
    %c0_1 = arith.constant 0 : index
    %c0_2 = arith.constant 0 : index
    %1 = vector.load %arg2[%c0_1, %c0_2] : memref<64x256xbf16, #tpu.memory_space<vmem>>, vector<64x256xbf16>
    %cst = arith.constant dense<0.000000e+00> : vector<8x256xf32>
    %2 = tpu.matmul %0, %1, %cst {dimension_numbers = #tpu.dot_dimension_numbers<[1], [0], [0], [1], [0, 0, 1, 1], [], []>} : vector<8x64xbf16>, vector<64x256xbf16>, vector<8x256xf32> -> vector<8x256xf32>
    %c0_3 = arith.constant 0 : index
    %c0_4 = arith.constant 0 : index
    %3 = vector.load %arg3[%c0_3, %c0_4] : memref<64x256xbf16, #tpu.memory_space<vmem>>, vector<64x256xbf16>
    %cst_5 = arith.constant dense<0.000000e+00> : vector<8x256xf32>
    %4 = tpu.matmul %0, %3, %cst_5 {dimension_numbers = #tpu.dot_dimension_numbers<[1], [0], [0], [1], [0, 0, 1, 1], [], []>} : vector<8x64xbf16>, vector<64x256xbf16>, vector<8x256xf32> -> vector<8x256xf32>
    %c0_6 = arith.constant 0 : index
    %c0_7 = arith.constant 0 : index
    %5 = vector.load %arg4[%c0_6, %c0_7] : memref<8x256xf32, #tpu.memory_space<vmem>>, vector<8x256xf32>
    %6 = arith.mulf %2, %5 : vector<8x256xf32>
    %c0_8 = arith.constant 0 : index
    %c0_9 = arith.constant 0 : index
    %7 = vector.load %arg5[%c0_8, %c0_9] : memref<8x256xf32, #tpu.memory_space<vmem>>, vector<8x256xf32>
    %8 = arith.mulf %4, %7 : vector<8x256xf32>
    %9 = arith.subf %6, %8 : vector<8x256xf32>
    %10 = arith.addf %2, %9 : vector<8x256xf32>
    %11 = arith.truncf %10 : vector<8x256xf32> to vector<8x256xbf16>
    %12 = arith.subf %4, %9 : vector<8x256xf32>
    %13 = arith.truncf %12 : vector<8x256xf32> to vector<8x256xbf16>
    %c0_10 = arith.constant 0 : index
    %c0_11 = arith.constant 0 : index
    %14 = vector.load %arg6[%c0_10, %c0_11] : memref<256x128xbf16, #tpu.memory_space<vmem>>, vector<256x128xbf16>
    %cst_12 = arith.constant dense<0.000000e+00> : vector<8x128xf32>
    %15 = tpu.matmul %11, %14, %cst_12 {dimension_numbers = #tpu.dot_dimension_numbers<[1], [0], [0], [1], [0, 0, 1, 1], [], []>} : vector<8x256xbf16>, vector<256x128xbf16>, vector<8x128xf32> -> vector<8x128xf32>
    %c0_13 = arith.constant 0 : index
    %c0_14 = arith.constant 0 : index
    %16 = vector.load %arg7[%c0_13, %c0_14] : memref<256x128xbf16, #tpu.memory_space<vmem>>, vector<256x128xbf16>
    %cst_15 = arith.constant dense<0.000000e+00> : vector<8x128xf32>
    %17 = tpu.matmul %13, %16, %cst_15 {dimension_numbers = #tpu.dot_dimension_numbers<[1], [0], [0], [1], [0, 0, 1, 1], [], []>} : vector<8x256xbf16>, vector<256x128xbf16>, vector<8x128xf32> -> vector<8x128xf32>
    %18 = arith.addf %15, %17 : vector<8x128xf32>
    %c0_16 = arith.constant 0 : index
    %c0_17 = arith.constant 0 : index
    %19 = vector.load %arg8[%c0_16, %c0_17] : memref<8x128xf32, #tpu.memory_space<vmem>>, vector<8x128xf32>
    tpu.vector_store %arg8[%c0_16, %c0_17], %18 {strides = array<i32>} : memref<8x128xf32, #tpu.memory_space<vmem>>, vector<8x128xf32>,
    return
  }
  func.func @transform_0(%arg0: i32) -> (i32, i32) {
    %c0_i32 = arith.constant 0 : i32
    %c0_i32_0 = arith.constant 0 : i32
    return %arg0, %c0_i32 : i32, i32
  }
  func.func @transform_1(%arg0: i32) -> (i32, i32) {
    %c0_i32 = arith.constant 0 : i32
    %c0_i32_0 = arith.constant 0 : i32
    %c0_i32_1 = arith.constant 0 : i32
    return %c0_i32, %c0_i32_0 : i32, i32
  }
  func.func @transform_2(%arg0: i32) -> (i32, i32) {
    %c0_i32 = arith.constant 0 : i32
    %c0_i32_0 = arith.constant 0 : i32
    %c0_i32_1 = arith.constant 0 : i32
    return %c0_i32, %c0_i32_0 : i32, i32
  }
  func.func @transform_3(%arg0: i32) -> (i32, i32) {
    %c0_i32 = arith.constant 0 : i32
    %c0_i32_0 = arith.constant 0 : i32
    return %arg0, %c0_i32 : i32, i32
  }
  func.func @transform_4(%arg0: i32) -> (i32, i32) {
    %c0_i32 = arith.constant 0 : i32
    %c0_i32_0 = arith.constant 0 : i32
    return %arg0, %c0_i32 : i32, i32
  }
  func.func @transform_5(%arg0: i32) -> (i32, i32) {
    %c0_i32 = arith.constant 0 : i32
    %c0_i32_0 = arith.constant 0 : i32
    %c0_i32_1 = arith.constant 0 : i32
    return %c0_i32, %c0_i32_0 : i32, i32
  }
  func.func @transform_6(%arg0: i32) -> (i32, i32) {
    %c0_i32 = arith.constant 0 : i32
    %c0_i32_0 = arith.constant 0 : i32
    %c0_i32_1 = arith.constant 0 : i32
    return %c0_i32, %c0_i32_0 : i32, i32
  }
  func.func @transform_7(%arg0: i32) -> (i32, i32) {
    %c0_i32 = arith.constant 0 : i32
    %c0_i32_0 = arith.constant 0 : i32
    return %arg0, %c0_i32 : i32, i32
  }
}

module attributes {stable_mosaic.version = 11 : i64} {
  func.func @_seasonal_kernel(%arg0: i32, %arg1: memref<8x64xbf16, #tpu.memory_space<vmem>>, %arg2: memref<64x256xbf16, #tpu.memory_space<vmem>>, %arg3: memref<64x256xbf16, #tpu.memory_space<vmem>>, %arg4: memref<8x256xf32, #tpu.memory_space<vmem>>, %arg5: memref<8x256xf32, #tpu.memory_space<vmem>>, %arg6: memref<256x128xbf16, #tpu.memory_space<vmem>>, %arg7: memref<256x128xbf16, #tpu.memory_space<vmem>>, %arg8: memref<8x128xf32, #tpu.memory_space<vmem>>) attributes {dimension_semantics = [#tpu.dimension_semantics<parallel>], iteration_bounds = array<i64: 1>, scalar_prefetch = 0 : i64, scratch_operands = 0 : i64, tpu.core_type = #tpu.core_type<tc>, window_params = [{transform_indices = @transform_0, window_bounds = array<i64: 8, 64>}, {pipeline_mode = #tpu.pipeline_mode<synchronous>, transform_indices = @transform_1, window_bounds = array<i64: 64, 256>}, {pipeline_mode = #tpu.pipeline_mode<synchronous>, transform_indices = @transform_2, window_bounds = array<i64: 64, 256>}, {transform_indices = @transform_3, window_bounds = array<i64: 8, 256>}, {transform_indices = @transform_4, window_bounds = array<i64: 8, 256>}, {pipeline_mode = #tpu.pipeline_mode<synchronous>, transform_indices = @transform_5, window_bounds = array<i64: 256, 128>}, {pipeline_mode = #tpu.pipeline_mode<synchronous>, transform_indices = @transform_6, window_bounds = array<i64: 256, 128>}, {transform_indices = @transform_7, window_bounds = array<i64: 8, 128>}]} {
    %c0 = arith.constant 0 : index
    %c0_0 = arith.constant 0 : index
    %0 = vector.load %arg1[%c0, %c0_0] : memref<8x64xbf16, #tpu.memory_space<vmem>>, vector<8x64xbf16>
    %c0_1 = arith.constant 0 : index
    %c0_2 = arith.constant 0 : index
    %1 = vector.load %arg2[%c0_1, %c0_2] : memref<64x256xbf16, #tpu.memory_space<vmem>>, vector<64x256xbf16>
    %cst = arith.constant dense<0.000000e+00> : vector<8x256xf32>
    %2 = tpu.matmul %0, %1, %cst {dimension_numbers = #tpu.dot_dimension_numbers<[1], [0], [0], [1], [0, 0, 1, 1], [], []>} : vector<8x64xbf16>, vector<64x256xbf16>, vector<8x256xf32> -> vector<8x256xf32>
    %c0_3 = arith.constant 0 : index
    %c0_4 = arith.constant 0 : index
    %3 = vector.load %arg3[%c0_3, %c0_4] : memref<64x256xbf16, #tpu.memory_space<vmem>>, vector<64x256xbf16>
    %cst_5 = arith.constant dense<0.000000e+00> : vector<8x256xf32>
    %4 = tpu.matmul %0, %3, %cst_5 {dimension_numbers = #tpu.dot_dimension_numbers<[1], [0], [0], [1], [0, 0, 1, 1], [], []>} : vector<8x64xbf16>, vector<64x256xbf16>, vector<8x256xf32> -> vector<8x256xf32>
    %c0_6 = arith.constant 0 : index
    %c0_7 = arith.constant 0 : index
    %5 = vector.load %arg4[%c0_6, %c0_7] : memref<8x256xf32, #tpu.memory_space<vmem>>, vector<8x256xf32>
    %6 = arith.mulf %2, %5 : vector<8x256xf32>
    %c0_8 = arith.constant 0 : index
    %c0_9 = arith.constant 0 : index
    %7 = vector.load %arg5[%c0_8, %c0_9] : memref<8x256xf32, #tpu.memory_space<vmem>>, vector<8x256xf32>
    %8 = arith.mulf %4, %7 : vector<8x256xf32>
    %9 = arith.subf %6, %8 : vector<8x256xf32>
    %10 = arith.addf %2, %9 : vector<8x256xf32>
    %11 = arith.truncf %10 : vector<8x256xf32> to vector<8x256xbf16>
    %12 = arith.subf %4, %9 : vector<8x256xf32>
    %13 = arith.truncf %12 : vector<8x256xf32> to vector<8x256xbf16>
    %c0_10 = arith.constant 0 : index
    %c0_11 = arith.constant 0 : index
    %14 = vector.load %arg6[%c0_10, %c0_11] : memref<256x128xbf16, #tpu.memory_space<vmem>>, vector<256x128xbf16>
    %cst_12 = arith.constant dense<0.000000e+00> : vector<8x128xf32>
    %15 = tpu.matmul %11, %14, %cst_12 {dimension_numbers = #tpu.dot_dimension_numbers<[1], [0], [0], [1], [0, 0, 1, 1], [], []>} : vector<8x256xbf16>, vector<256x128xbf16>, vector<8x128xf32> -> vector<8x128xf32>
    %c0_13 = arith.constant 0 : index
    %c0_14 = arith.constant 0 : index
    %16 = vector.load %arg7[%c0_13, %c0_14] : memref<256x128xbf16, #tpu.memory_space<vmem>>, vector<256x128xbf16>
    %cst_15 = arith.constant dense<0.000000e+00> : vector<8x128xf32>
    %17 = tpu.matmul %13, %16, %cst_15 {dimension_numbers = #tpu.dot_dimension_numbers<[1], [0], [0], [1], [0, 0, 1, 1], [], []>} : vector<8x256xbf16>, vector<256x128xbf16>, vector<8x128xf32> -> vector<8x128xf32>
    %18 = arith.addf %15, %17 : vector<8x128xf32>
    %c0_16 = arith.constant 0 : index
    %c0_17 = arith.constant 0 : index
    %19 = vector.load %arg8[%c0_16, %c0_17] : memref<8x128xf32, #tpu.memory_space<vmem>>, vector<8x128xf32>
    tpu.vector_store %arg8[%c0_16, %c0_17], %18 {strides = array<i32>} : memref<8x128xf32, #tpu.memory_space<vmem>>, vector<8x128xf32>,
    return
  }
  func.func @transform_0(%arg0: i32) -> (i32, i32) {
    %c0_i32 = arith.constant 0 : i32
    %c0_i32_0 = arith.constant 0 : i32
    return %arg0, %c0_i32 : i32, i32
  }
  func.func @transform_1(%arg0: i32) -> (i32, i32) {
    %c0_i32 = arith.constant 0 : i32
    %c0_i32_0 = arith.constant 0 : i32
    %c0_i32_1 = arith.constant 0 : i32
    return %c0_i32, %c0_i32_0 : i32, i32
  }
  func.func @transform_2(%arg0: i32) -> (i32, i32) {
    %c0_i32 = arith.constant 0 : i32
    %c0_i32_0 = arith.constant 0 : i32
    %c0_i32_1 = arith.constant 0 : i32
    return %c0_i32, %c0_i32_0 : i32, i32
  }
  func.func @transform_3(%arg0: i32) -> (i32, i32) {
    %c0_i32 = arith.constant 0 : i32
    %c0_i32_0 = arith.constant 0 : i32
    return %arg0, %c0_i32 : i32, i32
  }
  func.func @transform_4(%arg0: i32) -> (i32, i32) {
    %c0_i32 = arith.constant 0 : i32
    %c0_i32_0 = arith.constant 0 : i32
    return %arg0, %c0_i32 : i32, i32
  }
  func.func @transform_5(%arg0: i32) -> (i32, i32) {
    %c0_i32 = arith.constant 0 : i32
    %c0_i32_0 = arith.constant 0 : i32
    %c0_i32_1 = arith.constant 0 : i32
    return %c0_i32, %c0_i32_0 : i32, i32
  }
  func.func @transform_6(%arg0: i32) -> (i32, i32) {
    %c0_i32 = arith.constant 0 : i32
    %c0_i32_0 = arith.constant 0 : i32
    %c0_i32_1 = arith.constant 0 : i32
    return %c0_i32, %c0_i32_0 : i32, i32
  }
  func.func @transform_7(%arg0: i32) -> (i32, i32) {
    %c0_i32 = arith.constant 0 : i32
    %c0_i32_0 = arith.constant 0 : i32
    return %arg0, %c0_i32 : i32, i32
  }
}

</mosaic_0001>

<bundles_post_ra>
// kernel: tpu_custom_call.1
= control target key start
LH: loop header
LB: loop body
LE: loop exit
PB: predicated region body
PF: predicated region fallthrough
CT: control target
= control target key end

     0   :  { %12 = vsyncpa [#allocation3], 0  ;;  %s1183_s0 = inlined_call_operand.hbm [shape: bf16[8,64], index: 0, kind: input, shape index: {}]   ;;  %s1184_s1 = inlined_call_operand.hbm [shape: bf16[64,256], index: 1, kind: input, shape index: {}]   ;;  %s1185_s2 = inlined_call_operand.hbm [shape: bf16[64,256], index: 2, kind: input, shape index: {}]   ;;  %s1186_s3 = inlined_call_operand.hbm [shape: f32[8,256], index: 3, kind: input, shape index: {}]   ;;  %s1187_s4 = inlined_call_operand.hbm [shape: f32[8,256], index: 4, kind: input, shape index: {}]   ;;  %s1188_s5 = inlined_call_operand.hbm [shape: bf16[256,128], index: 5, kind: input, shape index: {}]   ;;  %s1189_s6 = inlined_call_operand.hbm [shape: bf16[256,128], index: 6, kind: input, shape index: {}]   ;;  %s1190_s7 = inlined_call_operand.hbm [shape: f32[8,128], index: 7, kind: output, shape index: {}]  }
   0x1   :  { %13 = vsyncpa [#allocation6], 0 }
   0x2   :  { %14 = vsyncpa [#allocation9], 0 }
   0x3   :  { %15 = vsyncpa [#allocation12], 0 }
   0x4   :  { %16 = vsyncpa [#allocation4], 0  ;;  %s1022_s24 = smov [#allocation5]   ;;  %s836_s28 = scalar_lea.hbm %s1184_s1, 1024 }
   0x5   :  { %s32_s25 = sshll.u32 %s1022_s24, 4  ;;  %p837_p0 = scmp.ne.s32.totalorder %s1184_s1, %s836_s28  ;;  %s33_s25 = int_to_ptr.vmem [resolvable:$true] %s32_s25 }
   0x6   :  { %p840_p1 = scmp.lt.u32.totalorder %s836_s28, %s1184_s1 }
   0x8   :  { %p842_p2 = pnand %p840_p1, %p837_p0 }
   0xa   :  { %845 = shalt.err (!%p842_p2)
}
   0xb   :  { %s846_s10 = scalar_lea.vmem %s33_s25, 1024  ;;  %p851_p4 = scmp.lt.s32.totalorder %s33_s25, %s33_s25 }
   0xc   :  { %p847_p3 = scmp.ne.s32.totalorder %s33_s25, %s846_s10  ;;  %p852_p5 = scmp.lt.s32.totalorder %s846_s10, %s846_s10 }
   0xe   :  { %p853_p6 = por %p852_p5, %p851_p4 }
  0x10   :  { %p854_p7 = pnand %p853_p6, %p847_p3 }
  0x12   :  { %857 = shalt.err (!%p854_p7)
}
  0x13   :  { %s1023_s11 = smov 128   ;;  %s1024_s12 = smov 8  }
  0x14   :  { %38 = dma.hbm_to_vmem [thread:$0]  %s1184_s1, 1024, %s33_s25, [#allocation6], %s1023_s11, %s1023_s11, %s1024_s12  }
  0x15   :  { %s1025_s15 = smov [#allocation8]   ;;  %s1026_s17 = smov [#allocation11]  }
  0x16   :  { %s57_s16 = sshll.u32 %s1025_s15, 4  ;;  %s76_s18 = sshll.u32 %s1026_s17, 4  ;;  %s58_s16 = int_to_ptr.vmem [resolvable:$true] %s57_s16  ;;  %s77_s18 = int_to_ptr.vmem [resolvable:$true] %s76_s18 }
  0x17   :  { %s858_s21 = scalar_lea.hbm %s1186_s3, 256 }
  0x18   :  { %p859_p8 = scmp.ne.s32.totalorder %s1186_s3, %s858_s21  ;;  %p862_p9 = scmp.lt.u32.totalorder %s858_s21, %s1186_s3 }
  0x1a   :  { %p864_p10 = pnand %p862_p9, %p859_p8 }
  0x1c   :  { %867 = shalt.err (!%p864_p10)
}
  0x1d   :  { %s868_s1 = scalar_lea.vmem %s58_s16, 256  ;;  %p873_p12 = scmp.lt.s32.totalorder %s58_s16, %s58_s16 }
  0x1e   :  { %p869_p11 = scmp.ne.s32.totalorder %s58_s16, %s868_s1  ;;  %p874_p13 = scmp.lt.s32.totalorder %s868_s1, %s868_s1 }
  0x20   :  { %p875_p0 = por %p874_p13, %p873_p12 }
  0x22   :  { %p876_p1 = pnand %p875_p0, %p869_p11 }
  0x24   :  { %879 = shalt.err (!%p876_p1)
}
  0x25   :  { %60 = dma.hbm_to_vmem [thread:$0]  %s1186_s3, 256, %s58_s16, [#allocation9]  }
  0x26   :  { %s880_s30 = scalar_lea.hbm %s1188_s5, 2048 }
  0x27   :  { %p881_p2 = scmp.ne.s32.totalorder %s1188_s5, %s880_s30  ;;  %p884_p3 = scmp.lt.u32.totalorder %s880_s30, %s1188_s5 }
  0x29   :  { %p886_p4 = pnand %p884_p3, %p881_p2 }
  0x2b   :  { %889 = shalt.err (!%p886_p4)
}
  0x2c   :  { %s890_s14 = scalar_lea.vmem %s77_s18, 2048  ;;  %p895_p6 = scmp.lt.s32.totalorder %s77_s18, %s77_s18 }
  0x2d   :  { %p891_p5 = scmp.ne.s32.totalorder %s77_s18, %s890_s14  ;;  %p896_p7 = scmp.lt.s32.totalorder %s890_s14, %s890_s14 }
  0x2f   :  { %p897_p8 = por %p896_p7, %p895_p6 }
  0x31   :  { %p898_p9 = pnand %p897_p8, %p891_p5 }
  0x33   :  { %901 = shalt.err (!%p898_p9)
}
  0x34   :  { %s1027_s3 = smov 64   ;;  %s1028_s15 = smov 4  }
  0x35   :  { %82 = dma.hbm_to_vmem [thread:$0]  %s1188_s5, 2048, %s77_s18, [#allocation12], %s1027_s3, %s1027_s3, %s1028_s15  }
  0x36   :  { %s1029_s19 = smov [#allocation2]   ;;  %s1030_s21 = smov [#allocation7]  }
  0x37   :  { %s23_s20 = sshll.u32 %s1029_s19, 4  ;;  %s44_s22 = sshll.u32 %s1030_s21, 4  ;;  %s24_s20 = int_to_ptr.vmem [resolvable:$true] %s23_s20  ;;  %s45_s22 = int_to_ptr.vmem [resolvable:$true] %s44_s22 }
  0x38   :  { %s902_s26 = scalar_lea.hbm %s1183_s0, 64 }
  0x39   :  { %p903_p10 = scmp.ne.s32.totalorder %s1183_s0, %s902_s26  ;;  %p906_p11 = scmp.lt.u32.totalorder %s902_s26, %s1183_s0 }
  0x3b   :  { %p908_p12 = pnand %p906_p11, %p903_p10 }
  0x3d   :  { %911 = shalt.err (!%p908_p12)
}
  0x3e   :  { %s912_s5 = scalar_lea.vmem %s24_s20, 64  ;;  %p917_p0 = scmp.lt.s32.totalorder %s24_s20, %s24_s20 }
  0x3f   :  { %p913_p13 = scmp.ne.s32.totalorder %s24_s20, %s912_s5  ;;  %p918_p1 = scmp.lt.s32.totalorder %s912_s5, %s912_s5 }
  0x41   :  { %p919_p2 = por %p918_p1, %p917_p0 }
  0x43   :  { %p920_p3 = pnand %p919_p2, %p913_p13 }
  0x45   :  { %923 = shalt.err (!%p920_p3)
}
  0x46   :  { %26 = dma.hbm_to_vmem [thread:$0]  %s1183_s0, 64, %s24_s20, [#allocation3]  }
  0x47   :  { %s924_s9 = scalar_lea.hbm %s1185_s2, 1024 }
  0x48   :  { %p925_p4 = scmp.ne.s32.totalorder %s1185_s2, %s924_s9  ;;  %p928_p5 = scmp.lt.u32.totalorder %s924_s9, %s1185_s2 }
  0x4a   :  { %p930_p6 = pnand %p928_p5, %p925_p4 }
  0x4c   :  { %933 = shalt.err (!%p930_p6)
}
  0x4d   :  { %s934_s17 = scalar_lea.vmem %s45_s22, 1024  ;;  %p939_p8 = scmp.lt.s32.totalorder %s45_s22, %s45_s22 }
  0x4e   :  { %p935_p7 = scmp.ne.s32.totalorder %s45_s22, %s934_s17  ;;  %p940_p9 = scmp.lt.s32.totalorder %s934_s17, %s934_s17 }
  0x50   :  { %p941_p10 = por %p940_p9, %p939_p8 }
  0x52   :  { %p942_p11 = pnand %p941_p10, %p935_p7 }
  0x54   :  { %945 = shalt.err (!%p942_p11)
}
  0x55   :  { %50 = dma.hbm_to_vmem [thread:$0]  %s1185_s2, 1024, %s45_s22, [#allocation6], %s1023_s11, %s1023_s11, %s1024_s12  }
  0x56   :  { %s1031_s20 = smov [#allocation10]   ;;  %s1032_s23 = smov [#allocation13]  }
  0x57   :  { %s67_s21 = sshll.u32 %s1031_s20, 4  ;;  %s88_s24 = sshll.u32 %s1032_s23, 4  ;;  %s68_s21 = int_to_ptr.vmem [resolvable:$true] %s67_s21  ;;  %s89_s24 = int_to_ptr.vmem [resolvable:$true] %s88_s24 }
  0x58   :  { %s946_s25 = scalar_lea.hbm %s1187_s4, 256 }
  0x59   :  { %p947_p12 = scmp.ne.s32.totalorder %s1187_s4, %s946_s25  ;;  %p950_p13 = scmp.lt.u32.totalorder %s946_s25, %s1187_s4 }
  0x5b   :  { %p952_p0 = pnand %p950_p13, %p947_p12 }
  0x5d   :  { %955 = shalt.err (!%p952_p0)
}
  0x5e   :  { %s956_s2 = scalar_lea.vmem %s68_s21, 256  ;;  %p961_p2 = scmp.lt.s32.totalorder %s68_s21, %s68_s21 }
  0x5f   :  { %p957_p1 = scmp.ne.s32.totalorder %s68_s21, %s956_s2  ;;  %p962_p3 = scmp.lt.s32.totalorder %s956_s2, %s956_s2 }
  0x61   :  { %p963_p4 = por %p962_p3, %p961_p2 }
  0x63   :  { %p964_p5 = pnand %p963_p4, %p957_p1 }
  0x65   :  { %967 = shalt.err (!%p964_p5)
}
  0x66   :  { %70 = dma.hbm_to_vmem [thread:$0]  %s1187_s4, 256, %s68_s21, [#allocation9]  }
  0x67   :  { %s968_s30 = scalar_lea.hbm %s1189_s6, 2048 }
  0x68   :  { %p969_p6 = scmp.ne.s32.totalorder %s1189_s6, %s968_s30  ;;  %p972_p7 = scmp.lt.u32.totalorder %s968_s30, %s1189_s6 }
  0x6a   :  { %p974_p8 = pnand %p972_p7, %p969_p6 }
  0x6c   :  { %977 = shalt.err (!%p974_p8)
}
  0x6d   :  { %s978_s14 = scalar_lea.vmem %s89_s24, 2048  ;;  %p983_p10 = scmp.lt.s32.totalorder %s89_s24, %s89_s24 }
  0x6e   :  { %p979_p9 = scmp.ne.s32.totalorder %s89_s24, %s978_s14  ;;  %p984_p11 = scmp.lt.s32.totalorder %s978_s14, %s978_s14 }
  0x70   :  { %p985_p12 = por %p984_p11, %p983_p10 }
  0x72   :  { %p986_p13 = pnand %p985_p12, %p979_p9 }
  0x74   :  { %989 = shalt.err (!%p986_p13)
}
  0x75   :  { %94 = dma.hbm_to_vmem [thread:$0]  %s1189_s6, 2048, %s89_s24, [#allocation12], %s1027_s3, %s1027_s3, %s1028_s15  }
  0x76   :  { %1012 = dma.done.wait [#allocation3], 64  }
  0x77   :  { %1013 = vsyncadd [#allocation3], 4294967232 }
  0x78   :  { %1014 = dma.done.wait [#allocation6], 2048  }
  0x79   :  { %1015 = vsyncadd [#allocation6], 4294965248 }
  0x7a   :  { %1016 = dma.done.wait [#allocation9], 512  }
  0x7b   :  { %1017 = vsyncadd [#allocation9], 4294966784 }
  0x7c   :  { %1018 = dma.done.wait [#allocation12], 4096  }
  0x7d   :  { %1019 = vsyncadd [#allocation12], 4294963200  ;;  %v1033_v0 = vmov 0   ;;  %v780_v1 = vld [vmem:[#allocation5 + $0x4] ss:$8 sps:$4 sm:$0xff]   ;;  %vm166_vm0 = vcmask 523264  }
  0x7e   :  { %202 = vmatprep.mubr.bf16.mxu0 %v1033_v0  ;;  %291 = vmatprep.mubr.bf16.mxu1 %v1033_v0  ;;  %v782_v2 = vld [vmem:[#allocation7 + $0x4] ss:$8 sps:$4 sm:$0xff]   ;;  %v784_v3 = vld [vmem:[#allocation5] ss:$8 sps:$4 sm:$0xff]   ;;  %v786_v5 = vld [vmem:[#allocation5 + $0x14] ss:$8 sps:$4 sm:$0xff]  }
  0x7f   :  { %170 = vmatprep.subr.bf16.mxu0 %v780_v1  ;;  %v785_v4 = vld [vmem:[#allocation7] ss:$8 sps:$4 sm:$0xff]   ;;  %259 = vmatprep.subr.bf16.mxu1 %v782_v2  ;;  %v788_v6 = vld [vmem:[#allocation7 + $0x14] ss:$8 sps:$4 sm:$0xff]   ;;  %v790_v7 = vld [vmem:[#allocation5 + $0x10] ss:$8 sps:$4 sm:$0xff]  }
  0x80   :  { %171 = vmatpush1.bf16.msra.mxu0 %v784_v3  ;;  %260 = vmatpush1.bf16.msra.mxu1 %v785_v4  ;;  %v791_v8 = vld [vmem:[#allocation7 + $0x10] ss:$8 sps:$4 sm:$0xff]   ;;  %v792_v9 = vld [vmem:[#allocation5 + $0x24] ss:$8 sps:$4 sm:$0xff]   ;;  %v796_v11 = vld [vmem:[#allocation5 + $0x20] ss:$8 sps:$4 sm:$0xff]  }
  0x81   :  { %172 = vmatprep.subr.bf16.mxu0 %v786_v5  ;;  %261 = vmatprep.subr.bf16.mxu1 %v788_v6  ;;  %v794_v10 = vld [vmem:[#allocation7 + $0x24] ss:$8 sps:$4 sm:$0xff]   ;;  %v797_v12 = vld [vmem:[#allocation7 + $0x20] ss:$8 sps:$4 sm:$0xff]   ;;  %v798_v13 = vld [vmem:[#allocation5 + $0x34] ss:$8 sps:$4 sm:$0xff]  }
  0x82   :  { %v800_v14 = vld [vmem:[#allocation7 + $0x34] ss:$8 sps:$4 sm:$0xff]   ;;  %v802_v15 = vld [vmem:[#allocation5 + $0x30] ss:$8 sps:$4 sm:$0xff]   ;;  %v804_v17 = vld [vmem:[#allocation13 + $0x40] sm:$0xff]   ;;  %s1034_s6 = smov [#allocation14]  }
  0x83   :  { %v803_v16 = vld [vmem:[#allocation7 + $0x30] ss:$8 sps:$4 sm:$0xff]   ;;  %v805_v18 = vld [vmem:[#allocation11 + $0x40] sm:$0xff]   ;;  %v117_v19 = vld [vmem:[#allocation2] sm:$0xf]  ;;  %s661_s3 = sshll.u32 %s1034_s6, 4  ;;  %s662_s3 = int_to_ptr.vmem [resolvable:$true] %s661_s3 }
  0x84   :  { %173 = vmatpush1.bf16.msra.mxu0 %v790_v7  ;;  %262 = vmatpush1.bf16.msra.mxu1 %v791_v8  ;;  %v806_v20 = vld [vmem:[#allocation13] sm:$0xff]   ;;  %v808_v22 = vld [vmem:[#allocation13 + $0x48] sm:$0xff]   ;;  %v812_v26 = vld [vmem:[#allocation13 + $0x50] sm:$0xff]   ;;  %s990_s15 = scalar_lea.vmem %s662_s3, 128  ;;  %p995_p1 = scmp.lt.s32.totalorder %s662_s3, %s662_s3 }
  0x85   :  { %174 = vmatprep.subr.bf16.mxu0 %v792_v9  ;;  %263 = vmatprep.subr.bf16.mxu1 %v794_v10  ;;  %v807_v21 = vld [vmem:[#allocation11] sm:$0xff]   ;;  %v809_v23 = vld [vmem:[#allocation11 + $0x48] sm:$0xff]   ;;  %v813_v27 = vld [vmem:[#allocation11 + $0x50] sm:$0xff]   ;;  %p991_p0 = scmp.ne.s32.totalorder %s662_s3, %s990_s15  ;;  %p996_p2 = scmp.lt.s32.totalorder %s990_s15, %s990_s15 }
  0x86   :  { %v810_v24 = vld [vmem:[#allocation13 + $0x8] sm:$0xff]   ;;  %v814_v28 = vld [vmem:[#allocation13 + $0x10] sm:$0xff]   ;;  %v816_v30 = vld [vmem:[#allocation13 + $0x58] sm:$0xff]  }
  0x87   :  { %v811_v25 = vld [vmem:[#allocation11 + $0x8] sm:$0xff]   ;;  %v815_v29 = vld [vmem:[#allocation11 + $0x10] sm:$0xff]   ;;  %v817_v31 = vld [vmem:[#allocation11 + $0x58] sm:$0xff]   ;;  %p997_p3 = por %p996_p2, %p995_p1 }
  0x88   :  { %175 = vmatpush1.bf16.msra.mxu0 %v796_v11  ;;  %264 = vmatpush1.bf16.msra.mxu1 %v797_v12  ;;  %v818_v32 = vld [vmem:[#allocation13 + $0x18] sm:$0xff]   ;;  %v820_v34 = vld [vmem:[#allocation13 + $0x60] sm:$0xff]   ;;  %v824_v38 = vld [vmem:[#allocation13 + $0x68] sm:$0xff]  }
  0x89   :  { %176 = vmatprep.subr.bf16.mxu0 %v798_v13  ;;  %265 = vmatprep.subr.bf16.mxu1 %v800_v14  ;;  %v819_v33 = vld [vmem:[#allocation11 + $0x18] sm:$0xff]   ;;  %v821_v35 = vld [vmem:[#allocation11 + $0x60] sm:$0xff]   ;;  %v825_v39 = vld [vmem:[#allocation11 + $0x68] sm:$0xff]   ;;  %p998_p4 = pnand %p997_p3, %p991_p0 }
  0x8a   :  { %v822_v36 = vld [vmem:[#allocation13 + $0x20] sm:$0xff]   ;;  %v826_v40 = vld [vmem:[#allocation13 + $0x28] sm:$0xff]   ;;  %v828_v42 = vld [vmem:[#allocation13 + $0x70] sm:$0xff]  }
  0x8b   :  { %v823_v37 = vld [vmem:[#allocation11 + $0x20] sm:$0xff]   ;;  %v827_v41 = vld [vmem:[#allocation11 + $0x28] sm:$0xff]   ;;  %v829_v43 = vld [vmem:[#allocation11 + $0x70] sm:$0xff]  }
  0x8c   :  { %177 = vmatpush1.bf16.msra.mxu0 %v802_v15  ;;  %266 = vmatpush1.bf16.msra.mxu1 %v803_v16  ;;  %v830_v44 = vld [vmem:[#allocation13 + $0x30] sm:$0xff]   ;;  %v832_v46 = vld [vmem:[#allocation13 + $0x78] sm:$0xff]   ;;  %v300_v50 = vld [vmem:[#allocation8] sm:$0xff] }
  0x8d   :  { %723 = vmatprep.subr.bf16.mxu0 %v804_v17  ;;  %745 = vmatprep.subr.bf16.mxu1 %v805_v18  ;;  %v831_v45 = vld [vmem:[#allocation11 + $0x30] sm:$0xff]   ;;  %v833_v47 = vld [vmem:[#allocation11 + $0x78] sm:$0xff]   ;;  %v301_v52 = vld [vmem:[#allocation8 + $0x8] sm:$0xff] }
  0x8e   :  { %v834_v48 = vld [vmem:[#allocation13 + $0x38] sm:$0xff]   ;;  %v304_v51 = vld [vmem:[#allocation10] sm:$0xff] }
  0x8f   :  { %681 = vmatmul.mubr.msk.bf16.vlgmr.msra.gmra.mrb[0].mxu0 %vm166_vm0, %v117_v19  ;;  %690 = vmatmul.mubr.msk.bf16.vlgmr.msra.gmra.mrb[0].mxu1 %vm166_vm0, %v117_v19  ;;  %v835_v49 = vld [vmem:[#allocation11 + $0x38] sm:$0xff]  }
  0x90   :  { %724 = vmatpush3.bf16.msra.mxu0 %v806_v20  ;;  %746 = vmatpush3.bf16.msra.mxu1 %v807_v21  ;;  %v305_v53 = vld [vmem:[#allocation10 + $0x8] sm:$0xff] }
  0x91   :  { %725 = vmatprep.subr.bf16.mxu0 %v808_v22  ;;  %747 = vmatprep.subr.bf16.mxu1 %v809_v23 }
  0x94   :  { %726 = vmatpush3.bf16.msra.mxu0 %v810_v24  ;;  %748 = vmatpush3.bf16.msra.mxu1 %v811_v25 }
  0x95   :  { %727 = vmatprep.subr.bf16.mxu0 %v812_v26  ;;  %749 = vmatprep.subr.bf16.mxu1 %v813_v27 }
  0x98   :  { %728 = vmatpush3.bf16.msra.mxu0 %v814_v28  ;;  %750 = vmatpush3.bf16.msra.mxu1 %v815_v29 }
  0x99   :  { %729 = vmatprep.subr.bf16.mxu0 %v816_v30  ;;  %751 = vmatprep.subr.bf16.mxu1 %v817_v31 }
  0x9c   :  { %730 = vmatpush3.bf16.msra.mxu0 %v818_v32  ;;  %752 = vmatpush3.bf16.msra.mxu1 %v819_v33 }
  0x9d   :  { %731 = vmatprep.subr.bf16.mxu0 %v820_v34  ;;  %753 = vmatprep.subr.bf16.mxu1 %v821_v35 }
  0xa0   :  { %732 = vmatpush3.bf16.msra.mxu0 %v822_v36  ;;  %754 = vmatpush3.bf16.msra.mxu1 %v823_v37 }
  0xa1   :  { %733 = vmatprep.subr.bf16.mxu0 %v824_v38  ;;  %755 = vmatprep.subr.bf16.mxu1 %v825_v39 }
  0xa4   :  { %734 = vmatpush3.bf16.msra.mxu0 %v826_v40  ;;  %756 = vmatpush3.bf16.msra.mxu1 %v827_v41 }
  0xa5   :  { %735 = vmatprep.subr.bf16.mxu0 %v828_v42  ;;  %757 = vmatprep.subr.bf16.mxu1 %v829_v43 }
  0xa8   :  { %736 = vmatpush3.bf16.msra.mxu0 %v830_v44  ;;  %758 = vmatpush3.bf16.msra.mxu1 %v831_v45 }
  0xa9   :  { %737 = vmatprep.subr.bf16.mxu0 %v832_v46  ;;  %759 = vmatprep.subr.bf16.mxu1 %v833_v47 }
  0xac   :  { %738 = vmatpush3.bf16.msra.mxu0 %v834_v48  ;;  %760 = vmatpush3.bf16.msra.mxu1 %v835_v49 }
 0x162   :  { %v204_v54 = vpop.f32.mrb[0].mxu0  ;;  %v293_v55 = vpop.f32.mrb[0].mxu1 }
 0x163   :  { %v302_v56 = vmul.f32 %v300_v50, %v204_v54  ;;  %v306_v57 = vmul.f32 %v304_v51, %v293_v55  ;;  %v206_v58 = vpop.f32.mrb[1].mxu0  ;;  %v295_v59 = vpop.f32.mrb[1].mxu1 }
 0x164   :  { %v303_v60 = vmul.f32 %v301_v52, %v206_v58  ;;  %v307_v61 = vmul.f32 %v305_v53, %v295_v59  ;;  %v208_v62 = vpop.f32.mrb[2].mxu0  ;;  %v297_v63 = vpop.f32.mrb[2].mxu1 }
 0x165   :  { %v308_v0 = vsub.f32 %v302_v56, %v306_v57  ;;  %v209_v1 = vpop.f32.mrb[3].mxu0  ;;  %v298_v2 = vpop.f32.mrb[3].mxu1 }
 0x166   :  { %v309_v3 = vsub.f32 %v303_v60, %v307_v61 }
 0x167   :  { %v310_v4 = vadd.f32 %v308_v0, %v204_v54  ;;  %v314_v5 = vsub.f32 %v293_v55, %v308_v0 }
 0x168   :  { %v315_v6 = vsub.f32 %v295_v59, %v309_v3  ;;  %v311_v7 = vadd.f32 %v309_v3, %v206_v58 }
 0x169   :  { %v312_v10 = vpack.c.bf16 %v310_v4, %v310_v4  ;;  %v316_v11 = vpack.c.bf16 %v314_v5, %v314_v5 }
 0x16a   :  { %v317_v8 = vpack.c.bf16 %v315_v6, %v315_v6  ;;  %v313_v9 = vpack.c.bf16 %v311_v7, %v311_v7 }
 0x16c   :  { %510 = vmatprep.mubr.bf16.mxu0 %v317_v8  ;;  %646 = vmatprep.mubr.bf16.mxu1 %v313_v9 }
 0x16d   :  { %511 = vmatmul.mubr.bf16.vlgmr.msra.gmra.mrb[4].mxu0 %v316_v11  ;;  %647 = vmatmul.mubr.bf16.vlgmr.msra.gmra.mrb[4].mxu1 %v312_v10 }
 0x240   :  { %v739_v12 = vpop.f32.mrb[4].mxu0  ;;  %v761_v13 = vpop.f32.mrb[4].mxu1 }
 0x241   :  { %v740_v14 = vpop.f32.mrb[5].mxu0  ;;  %v762_v15 = vpop.f32.mrb[5].mxu1 }
 0x242   :  { %v741_v16 = vadd.f32 %v740_v14, %v739_v12  ;;  %v763_v17 = vadd.f32 %v762_v15, %v761_v13  ;;  %v742_v18 = vpop.f32.mrb[6].mxu0  ;;  %v764_v19 = vpop.f32.mrb[6].mxu1 }
 0x243   :  { %v743_v20 = vpop.f32.mrb[7].mxu0  ;;  %v765_v21 = vpop.f32.mrb[7].mxu1 }
 0x244   :  { %v649_v22 = vadd.f32 %v763_v17, %v741_v16 }
 0x246   :  { %654 = vst [vmem:[#allocation14] sm:$0xff] %v649_v22 }
 0x247   :  { %1001 = shalt.err (!%p998_p4)
}
 0x248   :  { %s1002_s19 = scalar_lea.hbm %s1190_s7, 128 }
 0x249   :  { %p1003_p5 = scmp.ne.s32.totalorder %s1190_s7, %s1002_s19  ;;  %p1006_p6 = scmp.lt.u32.totalorder %s1002_s19, %s1190_s7 }
 0x24b   :  { %p1008_p7 = pnand %p1006_p6, %p1003_p5 }
 0x24d   :  { %1011 = shalt.err (!%p1008_p7)
}
 0x24e   :  { %664 = dma.vmem_to_hbm [thread:$0]  %s662_s3, 128, %s1190_s7, [#allocation4]  }
 0x24f   :  { %1020 = dma.done.wait [#allocation4], 128  }
 0x250   :  { %1021 = vsyncadd [#allocation4], 4294967168 }
 0x251   :  { %668 = vsyncpa [#allocation3], 1 }
 0x252   :  { %669 = vsyncpa [#allocation6], 1 }
 0x253   :  { %670 = vsyncpa [#allocation9], 1 }
 0x254   :  { %671 = vsyncpa [#allocation12], 1 }
 0x255   :  { %672 = vsyncpa [#allocation4], 1 }

// kernel: tpu_custom_call.1
= control target key start
LH: loop header
LB: loop body
LE: loop exit
PB: predicated region body
PF: predicated region fallthrough
CT: control target
= control target key end

     0   :  { %12 = vsyncpa [#allocation3], 0  ;;  %s1183_s0 = inlined_call_operand.hbm [shape: bf16[8,64], index: 0, kind: input, shape index: {}]   ;;  %s1184_s1 = inlined_call_operand.hbm [shape: bf16[64,256], index: 1, kind: input, shape index: {}]   ;;  %s1185_s2 = inlined_call_operand.hbm [shape: bf16[64,256], index: 2, kind: input, shape index: {}]   ;;  %s1186_s3 = inlined_call_operand.hbm [shape: f32[8,256], index: 3, kind: input, shape index: {}]   ;;  %s1187_s4 = inlined_call_operand.hbm [shape: f32[8,256], index: 4, kind: input, shape index: {}]   ;;  %s1188_s5 = inlined_call_operand.hbm [shape: bf16[256,128], index: 5, kind: input, shape index: {}]   ;;  %s1189_s6 = inlined_call_operand.hbm [shape: bf16[256,128], index: 6, kind: input, shape index: {}]   ;;  %s1190_s7 = inlined_call_operand.hbm [shape: f32[8,128], index: 7, kind: output, shape index: {}]  }
   0x1   :  { %13 = vsyncpa [#allocation6], 0 }
   0x2   :  { %14 = vsyncpa [#allocation9], 0 }
   0x3   :  { %15 = vsyncpa [#allocation12], 0 }
   0x4   :  { %16 = vsyncpa [#allocation4], 0  ;;  %s1022_s24 = smov [#allocation5]   ;;  %s836_s28 = scalar_lea.hbm %s1184_s1, 1024 }
   0x5   :  { %s32_s25 = sshll.u32 %s1022_s24, 4  ;;  %p837_p0 = scmp.ne.s32.totalorder %s1184_s1, %s836_s28  ;;  %s33_s25 = int_to_ptr.vmem [resolvable:$true] %s32_s25 }
   0x6   :  { %p840_p1 = scmp.lt.u32.totalorder %s836_s28, %s1184_s1 }
   0x8   :  { %p842_p2 = pnand %p840_p1, %p837_p0 }
   0xa   :  { %845 = shalt.err (!%p842_p2)
}
   0xb   :  { %s846_s10 = scalar_lea.vmem %s33_s25, 1024  ;;  %p851_p4 = scmp.lt.s32.totalorder %s33_s25, %s33_s25 }
   0xc   :  { %p847_p3 = scmp.ne.s32.totalorder %s33_s25, %s846_s10  ;;  %p852_p5 = scmp.lt.s32.totalorder %s846_s10, %s846_s10 }
   0xe   :  { %p853_p6 = por %p852_p5, %p851_p4 }
  0x10   :  { %p854_p7 = pnand %p853_p6, %p847_p3 }
  0x12   :  { %857 = shalt.err (!%p854_p7)
}
  0x13   :  { %s1023_s11 = smov 128   ;;  %s1024_s12 = smov 8  }
  0x14   :  { %38 = dma.hbm_to_vmem [thread:$0]  %s1184_s1, 1024, %s33_s25, [#allocation6], %s1023_s11, %s1023_s11, %s1024_s12  }
  0x15   :  { %s1025_s15 = smov [#allocation8]   ;;  %s1026_s17 = smov [#allocation11]  }
  0x16   :  { %s57_s16 = sshll.u32 %s1025_s15, 4  ;;  %s76_s18 = sshll.u32 %s1026_s17, 4  ;;  %s58_s16 = int_to_ptr.vmem [resolvable:$true] %s57_s16  ;;  %s77_s18 = int_to_ptr.vmem [resolvable:$true] %s76_s18 }
  0x17   :  { %s858_s21 = scalar_lea.hbm %s1186_s3, 256 }
  0x18   :  { %p859_p8 = scmp.ne.s32.totalorder %s1186_s3, %s858_s21  ;;  %p862_p9 = scmp.lt.u32.totalorder %s858_s21, %s1186_s3 }
  0x1a   :  { %p864_p10 = pnand %p862_p9, %p859_p8 }
  0x1c   :  { %867 = shalt.err (!%p864_p10)
}
  0x1d   :  { %s868_s1 = scalar_lea.vmem %s58_s16, 256  ;;  %p873_p12 = scmp.lt.s32.totalorder %s58_s16, %s58_s16 }
  0x1e   :  { %p869_p11 = scmp.ne.s32.totalorder %s58_s16, %s868_s1  ;;  %p874_p13 = scmp.lt.s32.totalorder %s868_s1, %s868_s1 }
  0x20   :  { %p875_p0 = por %p874_p13, %p873_p12 }
  0x22   :  { %p876_p1 = pnand %p875_p0, %p869_p11 }
  0x24   :  { %879 = shalt.err (!%p876_p1)
}
  0x25   :  { %60 = dma.hbm_to_vmem [thread:$0]  %s1186_s3, 256, %s58_s16, [#allocation9]  }
  0x26   :  { %s880_s30 = scalar_lea.hbm %s1188_s5, 2048 }
  0x27   :  { %p881_p2 = scmp.ne.s32.totalorder %s1188_s5, %s880_s30  ;;  %p884_p3 = scmp.lt.u32.totalorder %s880_s30, %s1188_s5 }
  0x29   :  { %p886_p4 = pnand %p884_p3, %p881_p2 }
  0x2b   :  { %889 = shalt.err (!%p886_p4)
}
  0x2c   :  { %s890_s14 = scalar_lea.vmem %s77_s18, 2048  ;;  %p895_p6 = scmp.lt.s32.totalorder %s77_s18, %s77_s18 }
  0x2d   :  { %p891_p5 = scmp.ne.s32.totalorder %s77_s18, %s890_s14  ;;  %p896_p7 = scmp.lt.s32.totalorder %s890_s14, %s890_s14 }
  0x2f   :  { %p897_p8 = por %p896_p7, %p895_p6 }
  0x31   :  { %p898_p9 = pnand %p897_p8, %p891_p5 }
  0x33   :  { %901 = shalt.err (!%p898_p9)
}
  0x34   :  { %s1027_s3 = smov 64   ;;  %s1028_s15 = smov 4  }
  0x35   :  { %82 = dma.hbm_to_vmem [thread:$0]  %s1188_s5, 2048, %s77_s18, [#allocation12], %s1027_s3, %s1027_s3, %s1028_s15  }
  0x36   :  { %s1029_s19 = smov [#allocation2]   ;;  %s1030_s21 = smov [#allocation7]  }
  0x37   :  { %s23_s20 = sshll.u32 %s1029_s19, 4  ;;  %s44_s22 = sshll.u32 %s1030_s21, 4  ;;  %s24_s20 = int_to_ptr.vmem [resolvable:$true] %s23_s20  ;;  %s45_s22 = int_to_ptr.vmem [resolvable:$true] %s44_s22 }
  0x38   :  { %s902_s26 = scalar_lea.hbm %s1183_s0, 64 }
  0x39   :  { %p903_p10 = scmp.ne.s32.totalorder %s1183_s0, %s902_s26  ;;  %p906_p11 = scmp.lt.u32.totalorder %s902_s26, %s1183_s0 }
  0x3b   :  { %p908_p12 = pnand %p906_p11, %p903_p10 }
  0x3d   :  { %911 = shalt.err (!%p908_p12)
}
  0x3e   :  { %s912_s5 = scalar_lea.vmem %s24_s20, 64  ;;  %p917_p0 = scmp.lt.s32.totalorder %s24_s20, %s24_s20 }
  0x3f   :  { %p913_p13 = scmp.ne.s32.totalorder %s24_s20, %s912_s5  ;;  %p918_p1 = scmp.lt.s32.totalorder %s912_s5, %s912_s5 }
  0x41   :  { %p919_p2 = por %p918_p1, %p917_p0 }
  0x43   :  { %p920_p3 = pnand %p919_p2, %p913_p13 }
  0x45   :  { %923 = shalt.err (!%p920_p3)
}
  0x46   :  { %26 = dma.hbm_to_vmem [thread:$0]  %s1183_s0, 64, %s24_s20, [#allocation3]  }
  0x47   :  { %s924_s9 = scalar_lea.hbm %s1185_s2, 1024 }
  0x48   :  { %p925_p4 = scmp.ne.s32.totalorder %s1185_s2, %s924_s9  ;;  %p928_p5 = scmp.lt.u32.totalorder %s924_s9, %s1185_s2 }
  0x4a   :  { %p930_p6 = pnand %p928_p5, %p925_p4 }
  0x4c   :  { %933 = shalt.err (!%p930_p6)
}
  0x4d   :  { %s934_s17 = scalar_lea.vmem %s45_s22, 1024  ;;  %p939_p8 = scmp.lt.s32.totalorder %s45_s22, %s45_s22 }
  0x4e   :  { %p935_p7 = scmp.ne.s32.totalorder %s45_s22, %s934_s17  ;;  %p940_p9 = scmp.lt.s32.totalorder %s934_s17, %s934_s17 }
  0x50   :  { %p941_p10 = por %p940_p9, %p939_p8 }
  0x52   :  { %p942_p11 = pnand %p941_p10, %p935_p7 }
  0x54   :  { %945 = shalt.err (!%p942_p11)
}
  0x55   :  { %50 = dma.hbm_to_vmem [thread:$0]  %s1185_s2, 1024, %s45_s22, [#allocation6], %s1023_s11, %s1023_s11, %s1024_s12  }
  0x56   :  { %s1031_s20 = smov [#allocation10]   ;;  %s1032_s23 = smov [#allocation13]  }
  0x57   :  { %s67_s21 = sshll.u32 %s1031_s20, 4  ;;  %s88_s24 = sshll.u32 %s1032_s23, 4  ;;  %s68_s21 = int_to_ptr.vmem [resolvable:$true] %s67_s21  ;;  %s89_s24 = int_to_ptr.vmem [resolvable:$true] %s88_s24 }
  0x58   :  { %s946_s25 = scalar_lea.hbm %s1187_s4, 256 }
  0x59   :  { %p947_p12 = scmp.ne.s32.totalorder %s1187_s4, %s946_s25  ;;  %p950_p13 = scmp.lt.u32.totalorder %s946_s25, %s1187_s4 }
  0x5b   :  { %p952_p0 = pnand %p950_p13, %p947_p12 }
  0x5d   :  { %955 = shalt.err (!%p952_p0)
}
  0x5e   :  { %s956_s2 = scalar_lea.vmem %s68_s21, 256  ;;  %p961_p2 = scmp.lt.s32.totalorder %s68_s21, %s68_s21 }
  0x5f   :  { %p957_p1 = scmp.ne.s32.totalorder %s68_s21, %s956_s2  ;;  %p962_p3 = scmp.lt.s32.totalorder %s956_s2, %s956_s2 }
  0x61   :  { %p963_p4 = por %p962_p3, %p961_p2 }
  0x63   :  { %p964_p5 = pnand %p963_p4, %p957_p1 }
  0x65   :  { %967 = shalt.err (!%p964_p5)
}
  0x66   :  { %70 = dma.hbm_to_vmem [thread:$0]  %s1187_s4, 256, %s68_s21, [#allocation9]  }
  0x67   :  { %s968_s30 = scalar_lea.hbm %s1189_s6, 2048 }
  0x68   :  { %p969_p6 = scmp.ne.s32.totalorder %s1189_s6, %s968_s30  ;;  %p972_p7 = scmp.lt.u32.totalorder %s968_s30, %s1189_s6 }
  0x6a   :  { %p974_p8 = pnand %p972_p7, %p969_p6 }
  0x6c   :  { %977 = shalt.err (!%p974_p8)
}
  0x6d   :  { %s978_s14 = scalar_lea.vmem %s89_s24, 2048  ;;  %p983_p10 = scmp.lt.s32.totalorder %s89_s24, %s89_s24 }
  0x6e   :  { %p979_p9 = scmp.ne.s32.totalorder %s89_s24, %s978_s14  ;;  %p984_p11 = scmp.lt.s32.totalorder %s978_s14, %s978_s14 }
  0x70   :  { %p985_p12 = por %p984_p11, %p983_p10 }
  0x72   :  { %p986_p13 = pnand %p985_p12, %p979_p9 }
  0x74   :  { %989 = shalt.err (!%p986_p13)
}
  0x75   :  { %94 = dma.hbm_to_vmem [thread:$0]  %s1189_s6, 2048, %s89_s24, [#allocation12], %s1027_s3, %s1027_s3, %s1028_s15  }
  0x76   :  { %1012 = dma.done.wait [#allocation3], 64  }
  0x77   :  { %1013 = vsyncadd [#allocation3], 4294967232 }
  0x78   :  { %1014 = dma.done.wait [#allocation6], 2048  }
  0x79   :  { %1015 = vsyncadd [#allocation6], 4294965248 }
  0x7a   :  { %1016 = dma.done.wait [#allocation9], 512  }
  0x7b   :  { %1017 = vsyncadd [#allocation9], 4294966784 }
  0x7c   :  { %1018 = dma.done.wait [#allocation12], 4096  }
  0x7d   :  { %1019 = vsyncadd [#allocation12], 4294963200  ;;  %v1033_v0 = vmov 0   ;;  %v780_v1 = vld [vmem:[#allocation5 + $0x4] ss:$8 sps:$4 sm:$0xff]   ;;  %vm166_vm0 = vcmask 523264  }
  0x7e   :  { %202 = vmatprep.mubr.bf16.mxu0 %v1033_v0  ;;  %291 = vmatprep.mubr.bf16.mxu1 %v1033_v0  ;;  %v782_v2 = vld [vmem:[#allocation7 + $0x4] ss:$8 sps:$4 sm:$0xff]   ;;  %v784_v3 = vld [vmem:[#allocation5] ss:$8 sps:$4 sm:$0xff]   ;;  %v786_v5 = vld [vmem:[#allocation5 + $0x14] ss:$8 sps:$4 sm:$0xff]  }
  0x7f   :  { %170 = vmatprep.subr.bf16.mxu0 %v780_v1  ;;  %v785_v4 = vld [vmem:[#allocation7] ss:$8 sps:$4 sm:$0xff]   ;;  %259 = vmatprep.subr.bf16.mxu1 %v782_v2  ;;  %v788_v6 = vld [vmem:[#allocation7 + $0x14] ss:$8 sps:$4 sm:$0xff]   ;;  %v790_v7 = vld [vmem:[#allocation5 + $0x10] ss:$8 sps:$4 sm:$0xff]  }
  0x80   :  { %171 = vmatpush1.bf16.msra.mxu0 %v784_v3  ;;  %260 = vmatpush1.bf16.msra.mxu1 %v785_v4  ;;  %v791_v8 = vld [vmem:[#allocation7 + $0x10] ss:$8 sps:$4 sm:$0xff]   ;;  %v792_v9 = vld [vmem:[#allocation5 + $0x24] ss:$8 sps:$4 sm:$0xff]   ;;  %v796_v11 = vld [vmem:[#allocation5 + $0x20] ss:$8 sps:$4 sm:$0xff]  }
  0x81   :  { %172 = vmatprep.subr.bf16.mxu0 %v786_v5  ;;  %261 = vmatprep.subr.bf16.mxu1 %v788_v6  ;;  %v794_v10 = vld [vmem:[#allocation7 + $0x24] ss:$8 sps:$4 sm:$0xff]   ;;  %v797_v12 = vld [vmem:[#allocation7 + $0x20] ss:$8 sps:$4 sm:$0xff]   ;;  %v798_v13 = vld [vmem:[#allocation5 + $0x34] ss:$8 sps:$4 sm:$0xff]  }
  0x82   :  { %v800_v14 = vld [vmem:[#allocation7 + $0x34] ss:$8 sps:$4 sm:$0xff]   ;;  %v802_v15 = vld [vmem:[#allocation5 + $0x30] ss:$8 sps:$4 sm:$0xff]   ;;  %v804_v17 = vld [vmem:[#allocation13 + $0x40] sm:$0xff]   ;;  %s1034_s6 = smov [#allocation14]  }
  0x83   :  { %v803_v16 = vld [vmem:[#allocation7 + $0x30] ss:$8 sps:$4 sm:$0xff]   ;;  %v805_v18 = vld [vmem:[#allocation11 + $0x40] sm:$0xff]   ;;  %v117_v19 = vld [vmem:[#allocation2] sm:$0xf]  ;;  %s661_s3 = sshll.u32 %s1034_s6, 4  ;;  %s662_s3 = int_to_ptr.vmem [resolvable:$true] %s661_s3 }
  0x84   :  { %173 = vmatpush1.bf16.msra.mxu0 %v790_v7  ;;  %262 = vmatpush1.bf16.msra.mxu1 %v791_v8  ;;  %v806_v20 = vld [vmem:[#allocation13] sm:$0xff]   ;;  %v808_v22 = vld [vmem:[#allocation13 + $0x48] sm:$0xff]   ;;  %v812_v26 = vld [vmem:[#allocation13 + $0x50] sm:$0xff]   ;;  %s990_s15 = scalar_lea.vmem %s662_s3, 128  ;;  %p995_p1 = scmp.lt.s32.totalorder %s662_s3, %s662_s3 }
  0x85   :  { %174 = vmatprep.subr.bf16.mxu0 %v792_v9  ;;  %263 = vmatprep.subr.bf16.mxu1 %v794_v10  ;;  %v807_v21 = vld [vmem:[#allocation11] sm:$0xff]   ;;  %v809_v23 = vld [vmem:[#allocation11 + $0x48] sm:$0xff]   ;;  %v813_v27 = vld [vmem:[#allocation11 + $0x50] sm:$0xff]   ;;  %p991_p0 = scmp.ne.s32.totalorder %s662_s3, %s990_s15  ;;  %p996_p2 = scmp.lt.s32.totalorder %s990_s15, %s990_s15 }
  0x86   :  { %v810_v24 = vld [vmem:[#allocation13 + $0x8] sm:$0xff]   ;;  %v814_v28 = vld [vmem:[#allocation13 + $0x10] sm:$0xff]   ;;  %v816_v30 = vld [vmem:[#allocation13 + $0x58] sm:$0xff]  }
  0x87   :  { %v811_v25 = vld [vmem:[#allocation11 + $0x8] sm:$0xff]   ;;  %v815_v29 = vld [vmem:[#allocation11 + $0x10] sm:$0xff]   ;;  %v817_v31 = vld [vmem:[#allocation11 + $0x58] sm:$0xff]   ;;  %p997_p3 = por %p996_p2, %p995_p1 }
  0x88   :  { %175 = vmatpush1.bf16.msra.mxu0 %v796_v11  ;;  %264 = vmatpush1.bf16.msra.mxu1 %v797_v12  ;;  %v818_v32 = vld [vmem:[#allocation13 + $0x18] sm:$0xff]   ;;  %v820_v34 = vld [vmem:[#allocation13 + $0x60] sm:$0xff]   ;;  %v824_v38 = vld [vmem:[#allocation13 + $0x68] sm:$0xff]  }
  0x89   :  { %176 = vmatprep.subr.bf16.mxu0 %v798_v13  ;;  %265 = vmatprep.subr.bf16.mxu1 %v800_v14  ;;  %v819_v33 = vld [vmem:[#allocation11 + $0x18] sm:$0xff]   ;;  %v821_v35 = vld [vmem:[#allocation11 + $0x60] sm:$0xff]   ;;  %v825_v39 = vld [vmem:[#allocation11 + $0x68] sm:$0xff]   ;;  %p998_p4 = pnand %p997_p3, %p991_p0 }
  0x8a   :  { %v822_v36 = vld [vmem:[#allocation13 + $0x20] sm:$0xff]   ;;  %v826_v40 = vld [vmem:[#allocation13 + $0x28] sm:$0xff]   ;;  %v828_v42 = vld [vmem:[#allocation13 + $0x70] sm:$0xff]  }
  0x8b   :  { %v823_v37 = vld [vmem:[#allocation11 + $0x20] sm:$0xff]   ;;  %v827_v41 = vld [vmem:[#allocation11 + $0x28] sm:$0xff]   ;;  %v829_v43 = vld [vmem:[#allocation11 + $0x70] sm:$0xff]  }
  0x8c   :  { %177 = vmatpush1.bf16.msra.mxu0 %v802_v15  ;;  %266 = vmatpush1.bf16.msra.mxu1 %v803_v16  ;;  %v830_v44 = vld [vmem:[#allocation13 + $0x30] sm:$0xff]   ;;  %v832_v46 = vld [vmem:[#allocation13 + $0x78] sm:$0xff]   ;;  %v300_v50 = vld [vmem:[#allocation8] sm:$0xff] }
  0x8d   :  { %723 = vmatprep.subr.bf16.mxu0 %v804_v17  ;;  %745 = vmatprep.subr.bf16.mxu1 %v805_v18  ;;  %v831_v45 = vld [vmem:[#allocation11 + $0x30] sm:$0xff]   ;;  %v833_v47 = vld [vmem:[#allocation11 + $0x78] sm:$0xff]   ;;  %v301_v52 = vld [vmem:[#allocation8 + $0x8] sm:$0xff] }
  0x8e   :  { %v834_v48 = vld [vmem:[#allocation13 + $0x38] sm:$0xff]   ;;  %v304_v51 = vld [vmem:[#allocation10] sm:$0xff] }
  0x8f   :  { %681 = vmatmul.mubr.msk.bf16.vlgmr.msra.gmra.mrb[0].mxu0 %vm166_vm0, %v117_v19  ;;  %690 = vmatmul.mubr.msk.bf16.vlgmr.msra.gmra.mrb[0].mxu1 %vm166_vm0, %v117_v19  ;;  %v835_v49 = vld [vmem:[#allocation11 + $0x38] sm:$0xff]  }
  0x90   :  { %724 = vmatpush3.bf16.msra.mxu0 %v806_v20  ;;  %746 = vmatpush3.bf16.msra.mxu1 %v807_v21  ;;  %v305_v53 = vld [vmem:[#allocation10 + $0x8] sm:$0xff] }
  0x91   :  { %725 = vmatprep.subr.bf16.mxu0 %v808_v22  ;;  %747 = vmatprep.subr.bf16.mxu1 %v809_v23 }
  0x94   :  { %726 = vmatpush3.bf16.msra.mxu0 %v810_v24  ;;  %748 = vmatpush3.bf16.msra.mxu1 %v811_v25 }
  0x95   :  { %727 = vmatprep.subr.bf16.mxu0 %v812_v26  ;;  %749 = vmatprep.subr.bf16.mxu1 %v813_v27 }
  0x98   :  { %728 = vmatpush3.bf16.msra.mxu0 %v814_v28  ;;  %750 = vmatpush3.bf16.msra.mxu1 %v815_v29 }
  0x99   :  { %729 = vmatprep.subr.bf16.mxu0 %v816_v30  ;;  %751 = vmatprep.subr.bf16.mxu1 %v817_v31 }
  0x9c   :  { %730 = vmatpush3.bf16.msra.mxu0 %v818_v32  ;;  %752 = vmatpush3.bf16.msra.mxu1 %v819_v33 }
  0x9d   :  { %731 = vmatprep.subr.bf16.mxu0 %v820_v34  ;;  %753 = vmatprep.subr.bf16.mxu1 %v821_v35 }
  0xa0   :  { %732 = vmatpush3.bf16.msra.mxu0 %v822_v36  ;;  %754 = vmatpush3.bf16.msra.mxu1 %v823_v37 }
  0xa1   :  { %733 = vmatprep.subr.bf16.mxu0 %v824_v38  ;;  %755 = vmatprep.subr.bf16.mxu1 %v825_v39 }
  0xa4   :  { %734 = vmatpush3.bf16.msra.mxu0 %v826_v40  ;;  %756 = vmatpush3.bf16.msra.mxu1 %v827_v41 }
  0xa5   :  { %735 = vmatprep.subr.bf16.mxu0 %v828_v42  ;;  %757 = vmatprep.subr.bf16.mxu1 %v829_v43 }
  0xa8   :  { %736 = vmatpush3.bf16.msra.mxu0 %v830_v44  ;;  %758 = vmatpush3.bf16.msra.mxu1 %v831_v45 }
  0xa9   :  { %737 = vmatprep.subr.bf16.mxu0 %v832_v46  ;;  %759 = vmatprep.subr.bf16.mxu1 %v833_v47 }
  0xac   :  { %738 = vmatpush3.bf16.msra.mxu0 %v834_v48  ;;  %760 = vmatpush3.bf16.msra.mxu1 %v835_v49 }
 0x162   :  { %v204_v54 = vpop.f32.mrb[0].mxu0  ;;  %v293_v55 = vpop.f32.mrb[0].mxu1 }
 0x163   :  { %v302_v56 = vmul.f32 %v300_v50, %v204_v54  ;;  %v306_v57 = vmul.f32 %v304_v51, %v293_v55  ;;  %v206_v58 = vpop.f32.mrb[1].mxu0  ;;  %v295_v59 = vpop.f32.mrb[1].mxu1 }
 0x164   :  { %v303_v60 = vmul.f32 %v301_v52, %v206_v58  ;;  %v307_v61 = vmul.f32 %v305_v53, %v295_v59  ;;  %v208_v62 = vpop.f32.mrb[2].mxu0  ;;  %v297_v63 = vpop.f32.mrb[2].mxu1 }
 0x165   :  { %v308_v0 = vsub.f32 %v302_v56, %v306_v57  ;;  %v209_v1 = vpop.f32.mrb[3].mxu0  ;;  %v298_v2 = vpop.f32.mrb[3].mxu1 }
 0x166   :  { %v309_v3 = vsub.f32 %v303_v60, %v307_v61 }
 0x167   :  { %v310_v4 = vadd.f32 %v308_v0, %v204_v54  ;;  %v314_v5 = vsub.f32 %v293_v55, %v308_v0 }
 0x168   :  { %v315_v6 = vsub.f32 %v295_v59, %v309_v3  ;;  %v311_v7 = vadd.f32 %v309_v3, %v206_v58 }
 0x169   :  { %v312_v10 = vpack.c.bf16 %v310_v4, %v310_v4  ;;  %v316_v11 = vpack.c.bf16 %v314_v5, %v314_v5 }
 0x16a   :  { %v317_v8 = vpack.c.bf16 %v315_v6, %v315_v6  ;;  %v313_v9 = vpack.c.bf16 %v311_v7, %v311_v7 }
 0x16c   :  { %510 = vmatprep.mubr.bf16.mxu0 %v317_v8  ;;  %646 = vmatprep.mubr.bf16.mxu1 %v313_v9 }
 0x16d   :  { %511 = vmatmul.mubr.bf16.vlgmr.msra.gmra.mrb[4].mxu0 %v316_v11  ;;  %647 = vmatmul.mubr.bf16.vlgmr.msra.gmra.mrb[4].mxu1 %v312_v10 }
 0x240   :  { %v739_v12 = vpop.f32.mrb[4].mxu0  ;;  %v761_v13 = vpop.f32.mrb[4].mxu1 }
 0x241   :  { %v740_v14 = vpop.f32.mrb[5].mxu0  ;;  %v762_v15 = vpop.f32.mrb[5].mxu1 }
 0x242   :  { %v741_v16 = vadd.f32 %v740_v14, %v739_v12  ;;  %v763_v17 = vadd.f32 %v762_v15, %v761_v13  ;;  %v742_v18 = vpop.f32.mrb[6].mxu0  ;;  %v764_v19 = vpop.f32.mrb[6].mxu1 }
 0x243   :  { %v743_v20 = vpop.f32.mrb[7].mxu0  ;;  %v765_v21 = vpop.f32.mrb[7].mxu1 }
 0x244   :  { %v649_v22 = vadd.f32 %v763_v17, %v741_v16 }
 0x246   :  { %654 = vst [vmem:[#allocation14] sm:$0xff] %v649_v22 }
 0x247   :  { %1001 = shalt.err (!%p998_p4)
}
 0x248   :  { %s1002_s19 = scalar_lea.hbm %s1190_s7, 128 }
 0x249   :  { %p1003_p5 = scmp.ne.s32.totalorder %s1190_s7, %s1002_s19  ;;  %p1006_p6 = scmp.lt.u32.totalorder %s1002_s19, %s1190_s7 }
 0x24b   :  { %p1008_p7 = pnand %p1006_p6, %p1003_p5 }
 0x24d   :  { %1011 = shalt.err (!%p1008_p7)
}
 0x24e   :  { %664 = dma.vmem_to_hbm [thread:$0]  %s662_s3, 128, %s1190_s7, [#allocation4]  }
 0x24f   :  { %1020 = dma.done.wait [#allocation4], 128  }
 0x250   :  { %1021 = vsyncadd [#allocation4], 4294967168 }
 0x251   :  { %668 = vsyncpa [#allocation3], 1 }
 0x252   :  { %669 = vsyncpa [#allocation6], 1 }
 0x253   :  { %670 = vsyncpa [#allocation9], 1 }
 0x254   :  { %671 = vsyncpa [#allocation12], 1 }
 0x255   :  { %672 = vsyncpa [#allocation4], 1 }

</bundles_post_ra>
